<compile_context>
chip_gen: v7x
topology: tpu7x:2x2x1
jax: 0.10.0
libtpu: 0.0.40
codegen_flags: <defaults>
</compile_context>

<pallas_src>
import math

import jax
import jax.numpy as jnp
from jax.experimental import pallas as pl
from jax.experimental.pallas import tpu as pltpu

EPS = 1e-5          # RunningMeanStd epsilon
CLAMP_VALUE = 5.0   # config.norm_clamp_value


def _norm_kernel(x_ref, mean_ref, var_ref, o_ref):
    x = x_ref[...].astype(jnp.float32)            # (tb, tr, 128)
    mean = mean_ref[...].astype(jnp.float32)      # (tr, 128) broadcast over batch
    var = var_ref[...].astype(jnp.float32)
    inv_std = jax.lax.rsqrt(var + EPS)            # EUP slot -> effectively free here
    y = (x - mean[None, :, :]) * inv_std[None, :, :]
    y = jnp.clip(y, -CLAMP_VALUE, CLAMP_VALUE)
    o_ref[...] = y.astype(o_ref.dtype)


def _divisors_desc(n):
    return [d for d in range(n, 0, -1) if n % d == 0]


def _pick_tiles(B, R, budget_bytes):
    """Pick (batch_tile, row_tile) for (B, R, 128) f32 blocks under budget."""
    lane_bytes = 128 * 4  # one f32 row of 128 lanes

    # Batch tile: largest divisor of B that still leaves room for >= 8 rows.
    tb = 1
    for d in _divisors_desc(B):
        if d * 8 * lane_bytes <= budget_bytes or d == 1:
            tb = d
            break

    # Row tile: largest divisor of R that is a multiple of 8 (or R itself,
    # satisfying the (8,128) block constraint) and fits the byte budget.
    max_rows = max(1, budget_bytes // (tb * lane_bytes))
    tr = None
    for d in _divisors_desc(R):
        if d > max_rows:
            continue
        if d % 8 == 0 or d == R:
            tr = d
            break
    return tb, tr


def _norm_jax(x, mean, var, out_dtype):
    y = (x.astype(jnp.float32) - mean.astype(jnp.float32)[None, :]) * jax.lax.rsqrt(
        var.astype(jnp.float32)[None, :] + EPS
    )
    return jnp.clip(y, -CLAMP_VALUE, CLAMP_VALUE).astype(out_dtype)


def flatten_forward(
    obs_nchw,
    running_mean,
    running_var,
    *,
    block_budget_bytes=2 << 20,   # ~2 MiB/block: safe for v5e 16 MiB scoped VMEM,
                                  # big enough to amortize per-step overhead on v6e/v7x
    out_dtype=None,               # pass jnp.bfloat16 to halve write traffic if acceptable
    use_pallas=None,              # None -> auto (skip Pallas for tiny/awkward inputs)
):
    """Flatten (keep batch dim) + RunningMeanStd normalize + clamp.

    obs_nchw:                 (B, C, H, W) float tensor
    running_mean/running_var: (F,) where F = C*H*W
    returns:                  (B, F) in out_dtype (default: obs dtype)
    """
    B = obs_nchw.shape[0]
    F = math.prod(obs_nchw.shape[1:])
    x = obs_nchw.reshape(B, F)                       # glue: nn.Flatten()
    out_dtype = out_dtype or x.dtype

    pallas_ok = (F % 128 == 0) and F > 0
    tb = tr = None
    if pallas_ok:
        R = F // 128
        tb, tr = _pick_tiles(B, R, block_budget_bytes)
        pallas_ok = tr is not None

    if use_pallas is None:
        # Tiny inputs: pallas_call launch + pipeline prologue costs more than
        # the whole op; let XLA fuse it instead.
        use_pallas = pallas_ok and (B * F * 4 >= (1 << 20))
    if use_pallas and not pallas_ok:
        raise ValueError("Pallas path requires F to be a positive multiple of 128.")

    if not use_pallas:
        return _norm_jax(x, running_mean, running_var, out_dtype)

    R = F // 128
    # Sublane-dense layout: feature axis supplies sublanes + lanes.
    x3 = x.reshape(B, R, 128)
    mean2 = running_mean.astype(jnp.float32).reshape(R, 128)
    var2 = running_var.astype(jnp.float32).reshape(R, 128)

    # Feature axis OUTER, batch INNER -> mean/var block index is constant
    # across the inner batch loop (no redundant DMA).
    grid = (R // tr, B // tb)

    out3 = pl.pallas_call(
        _norm_kernel,
        out_shape=jax.ShapeDtypeStruct((B, R, 128), out_dtype),
        grid_spec=pltpu.PrefetchScalarGridSpec(
            num_scalar_prefetch=0,
            grid=grid,
            in_specs=[
                pl.BlockSpec((tb, tr, 128), lambda f, b: (b, f, 0)),
                pl.BlockSpec((tr, 128), lambda f, b: (f, 0)),
                pl.BlockSpec((tr, 128), lambda f, b: (f, 0)),
            ],
            out_specs=pl.BlockSpec((tb, tr, 128), lambda f, b: (b, f, 0)),
        ),
        compiler_params=pltpu.CompilerParams(
            dimension_semantics=("parallel", "parallel"),
        ),
    )(x3, mean2, var2)
    return out3.reshape(B, F)


def flatten_forward_reference(obs_nchw, running_mean, running_var):
    B = obs_nchw.shape[0]
    x = obs_nchw.reshape(B, -1).astype(jnp.float32)
    y = (x - running_mean[None, :]) / jnp.sqrt(running_var[None, :] + EPS)
    return jnp.clip(y, -CLAMP_VALUE, CLAMP_VALUE)


if __name__ == "__main__":
    key = jax.random.PRNGKey(0)

    # --- Case 1: small conv-style observation, single block ---------------
    k_obs, k_mean, k_var, key = jax.random.split(key, 4)
    B, C, H, W = 2, 4, 16, 16
    F = C * H * W  # num_in = 1024
    obs = jax.random.normal(k_obs, (B, C, H, W), dtype=jnp.float32)
    running_mean = 0.1 * jax.random.normal(k_mean, (F,), dtype=jnp.float32)
    running_var = 0.5 + jax.random.uniform(k_var, (F,), dtype=jnp.float32)

    out = flatten_forward(obs, running_mean, running_var, use_pallas=True)
    out = jax.block_until_ready(out)
    ref = flatten_forward_reference(obs, running_mean, running_var)
    assert out.shape == (B, F)
    assert jnp.allclose(out, ref, atol=1e-5, rtol=1e-5)

    # --- Case 2: slightly larger F with a tiny block budget so the 2-D ----
    # --- grid / mean-var reuse path is actually exercised (multi-block) ---
    k_obs2, k_mean2, k_var2, key = jax.random.split(key, 4)
    B2, C2, H2, W2 = 2, 16, 32, 32
    F2 = C2 * H2 * W2  # 16384 -> R = 128 rows of 128 lanes
    obs2 = jax.random.normal(k_obs2, (B2, C2, H2, W2), dtype=jnp.float32)
    mean2 = 0.1 * jax.random.normal(k_mean2, (F2,), dtype=jnp.float32)
    var2 = 0.5 + jax.random.uniform(k_var2, (F2,), dtype=jnp.float32)

    out2 = flatten_forward(
        obs2, mean2, var2, use_pallas=True, block_budget_bytes=16 << 10
    )
    out2 = jax.block_until_ready(out2)
    ref2 = flatten_forward_reference(obs2, mean2, var2)
    assert out2.shape == (B2, F2)
    assert jnp.allclose(out2, ref2, atol=1e-5, rtol=1e-5)

    print("KERNEL_OK")
</pallas_src>

<mosaic_0001>
module attributes {stable_mosaic.version = 11 : i64} {
  func.func @_norm_kernel(%arg0: i32, %arg1: i32, %arg2: memref<2x8x128xf32, #tpu.memory_space<vmem>>, %arg3: memref<8x128xf32, #tpu.memory_space<vmem>>, %arg4: memref<8x128xf32, #tpu.memory_space<vmem>>, %arg5: memref<2x8x128xf32, #tpu.memory_space<vmem>>) attributes {dimension_semantics = [#tpu.dimension_semantics<parallel>, #tpu.dimension_semantics<parallel>], iteration_bounds = array<i64: 1, 1>, scalar_prefetch = 0 : i64, scratch_operands = 0 : i64, tpu.core_type = #tpu.core_type<tc>, window_params = [{transform_indices = @transform_0, window_bounds = array<i64: 2, 8, 128>}, {transform_indices = @transform_1, window_bounds = array<i64: 8, 128>}, {transform_indices = @transform_2, window_bounds = array<i64: 8, 128>}, {transform_indices = @transform_3, window_bounds = array<i64: 2, 8, 128>}]} {
    %c0 = arith.constant 0 : index
    %c0_0 = arith.constant 0 : index
    %c0_1 = arith.constant 0 : index
    %0 = vector.load %arg2[%c0, %c0_0, %c0_1] : memref<2x8x128xf32, #tpu.memory_space<vmem>>, vector<2x8x128xf32>
    %c0_2 = arith.constant 0 : index
    %c0_3 = arith.constant 0 : index
    %1 = vector.load %arg3[%c0_2, %c0_3] : memref<8x128xf32, #tpu.memory_space<vmem>>, vector<8x128xf32>
    %c0_4 = arith.constant 0 : index
    %c0_5 = arith.constant 0 : index
    %2 = vector.load %arg4[%c0_4, %c0_5] : memref<8x128xf32, #tpu.memory_space<vmem>>, vector<8x128xf32>
    %cst = arith.constant 9.99999974E-6 : f32
    %3 = vector.broadcast %cst : f32 to vector<8x128xf32>
    %4 = arith.addf %2, %3 : vector<8x128xf32>
    %5 = math.rsqrt %4 : vector<8x128xf32>
    %6 = vector.shape_cast %1 : vector<8x128xf32> to vector<1x8x128xf32>
    %7 = vector.broadcast %6 : vector<1x8x128xf32> to vector<2x8x128xf32>
    %8 = arith.subf %0, %7 : vector<2x8x128xf32>
    %9 = vector.shape_cast %5 : vector<8x128xf32> to vector<1x8x128xf32>
    %10 = vector.broadcast %9 : vector<1x8x128xf32> to vector<2x8x128xf32>
    %11 = arith.mulf %8, %10 : vector<2x8x128xf32>
    %cst_6 = arith.constant -5.000000e+00 : f32
    %cst_7 = arith.constant 5.000000e+00 : f32
    %12 = vector.broadcast %cst_6 : f32 to vector<2x8x128xf32>
    %13 = arith.maximumf %12, %11 : vector<2x8x128xf32>
    %14 = vector.broadcast %cst_7 : f32 to vector<2x8x128xf32>
    %15 = arith.minimumf %14, %13 : vector<2x8x128xf32>
    %c0_8 = arith.constant 0 : index
    %c0_9 = arith.constant 0 : index
    %c0_10 = arith.constant 0 : index
    %16 = vector.load %arg5[%c0_8, %c0_9, %c0_10] : memref<2x8x128xf32, #tpu.memory_space<vmem>>, vector<2x8x128xf32>
    tpu.vector_store %arg5[%c0_8, %c0_9, %c0_10], %15 {strides = array<i32>} : memref<2x8x128xf32, #tpu.memory_space<vmem>>, vector<2x8x128xf32>,
    return
  }
  func.func @transform_0(%arg0: i32, %arg1: i32) -> (i32, i32, i32) {
    %c0_i32 = arith.constant 0 : i32
    %c0_i32_0 = arith.constant 0 : i32
    return %arg1, %arg0, %c0_i32 : i32, i32, i32
  }
  func.func @transform_1(%arg0: i32, %arg1: i32) -> (i32, i32) {
    %c0_i32 = arith.constant 0 : i32
    %c0_i32_0 = arith.constant 0 : i32
    return %arg0, %c0_i32 : i32, i32
  }
  func.func @transform_2(%arg0: i32, %arg1: i32) -> (i32, i32) {
    %c0_i32 = arith.constant 0 : i32
    %c0_i32_0 = arith.constant 0 : i32
    return %arg0, %c0_i32 : i32, i32
  }
  func.func @transform_3(%arg0: i32, %arg1: i32) -> (i32, i32, i32) {
    %c0_i32 = arith.constant 0 : i32
    %c0_i32_0 = arith.constant 0 : i32
    return %arg1, %arg0, %c0_i32 : i32, i32, i32
  }
}

</mosaic_0001>

<bundles_post_ra>
// kernel: tpu_custom_call.1
= control target key start
LH: loop header
LB: loop body
LE: loop exit
PB: predicated region body
PF: predicated region fallthrough
CT: control target
= control target key end

     0   :  { %8 = vsyncpa [#allocation3], 0  ;;  %s277_s0 = inlined_call_operand.hbm [shape: f32[2,8,128], index: 0, kind: input, shape index: {}]   ;;  %s278_s1 = inlined_call_operand.hbm [shape: f32[8,128], index: 1, kind: input, shape index: {}]   ;;  %s279_s2 = inlined_call_operand.hbm [shape: f32[8,128], index: 2, kind: input, shape index: {}]   ;;  %s280_s3 = inlined_call_operand.hbm [shape: f32[2,8,128], index: 3, kind: output, shape index: {}]  }
   0x1   :  { %9 = vsyncpa [#allocation6], 0 }
   0x2   :  { %10 = vsyncpa [#allocation4], 0  ;;  %s190_s12 = smov [#allocation5]   ;;  %s191_s14 = smov [#allocation2]  }
   0x3   :  { %s29_s13 = sshll.u32 %s190_s12, 4  ;;  %s16_s15 = sshll.u32 %s191_s14, 4  ;;  %s30_s13 = int_to_ptr.vmem [resolvable:$true] %s29_s13  ;;  %s216_s15 = int_to_ptr.vmem [resolvable:$true] %s16_s15 }
   0x4   :  { %s96_s18 = scalar_lea.hbm %s278_s1, 128 }
   0x5   :  { %p97_p0 = scmp.ne.s32.totalorder %s278_s1, %s96_s18  ;;  %p100_p1 = scmp.lt.u32.totalorder %s96_s18, %s278_s1 }
   0x7   :  { %p102_p2 = pnand %p100_p1, %p97_p0 }
   0x9   :  { %105 = shalt.err (!%p102_p2)
}
   0xa   :  { %s106_s23 = scalar_lea.vmem %s30_s13, 128  ;;  %p111_p4 = scmp.lt.s32.totalorder %s30_s13, %s30_s13 }
   0xb   :  { %p107_p3 = scmp.ne.s32.totalorder %s30_s13, %s106_s23  ;;  %p112_p5 = scmp.lt.s32.totalorder %s106_s23, %s106_s23 }
   0xd   :  { %p113_p6 = por %p112_p5, %p111_p4 }
   0xf   :  { %p114_p7 = pnand %p113_p6, %p107_p3 }
  0x11   :  { %117 = shalt.err (!%p114_p7)
}
  0x12   :  { %32 = dma.hbm_to_vmem [thread:$0]  %s278_s1, 128, %s30_s13, [#allocation6]  }
  0x13   :  { %s118_s28 = scalar_lea.hbm %s277_s0, 256 }
  0x14   :  { %p119_p8 = scmp.ne.s32.totalorder %s277_s0, %s118_s28  ;;  %p122_p9 = scmp.lt.u32.totalorder %s118_s28, %s277_s0 }
  0x16   :  { %p124_p10 = pnand %p122_p9, %p119_p8 }
  0x18   :  { %127 = shalt.err (!%p124_p10)
}
  0x19   :  { %s128_s6 = scalar_lea.vmem %s216_s15, 256  ;;  %p133_p12 = scmp.lt.s32.totalorder %s216_s15, %s216_s15 }
  0x1a   :  { %p129_p11 = scmp.ne.s32.totalorder %s216_s15, %s128_s6  ;;  %p134_p13 = scmp.lt.s32.totalorder %s128_s6, %s128_s6 }
  0x1c   :  { %p135_p0 = por %p134_p13, %p133_p12 }
  0x1e   :  { %p136_p1 = pnand %p135_p0, %p129_p11 }
  0x20   :  { %139 = shalt.err (!%p136_p1)
}
  0x21   :  { %s192_s1 = smov 128   ;;  %s193_s7 = smov 8  }
  0x22   :  { %22 = dma.hbm_to_vmem [thread:$0]  %s277_s0, 256, %s216_s15, [#allocation3], %s192_s1, %s192_s1, %s193_s7  }
  0x23   :  { %s194_s10 = smov [#allocation7]   ;;  %s140_s14 = scalar_lea.hbm %s279_s2, 128 }
  0x24   :  { %s39_s11 = sshll.u32 %s194_s10, 4  ;;  %p141_p2 = scmp.ne.s32.totalorder %s279_s2, %s140_s14  ;;  %s40_s11 = int_to_ptr.vmem [resolvable:$true] %s39_s11 }
  0x25   :  { %p144_p3 = scmp.lt.u32.totalorder %s140_s14, %s279_s2 }
  0x27   :  { %p146_p4 = pnand %p144_p3, %p141_p2 }
  0x29   :  { %149 = shalt.err (!%p146_p4)
}
  0x2a   :  { %s150_s20 = scalar_lea.vmem %s40_s11, 128  ;;  %p155_p6 = scmp.lt.s32.totalorder %s40_s11, %s40_s11 }
  0x2b   :  { %p151_p5 = scmp.ne.s32.totalorder %s40_s11, %s150_s20  ;;  %p156_p7 = scmp.lt.s32.totalorder %s150_s20, %s150_s20 }
  0x2d   :  { %p157_p8 = por %p156_p7, %p155_p6 }
  0x2f   :  { %p158_p9 = pnand %p157_p8, %p151_p5 }
  0x31   :  { %161 = shalt.err (!%p158_p9)
}
  0x32   :  { %42 = dma.hbm_to_vmem [thread:$0]  %s279_s2, 128, %s40_s11, [#allocation6]  }
  0x33   :  { %184 = dma.done.wait [#allocation3], 256  }
  0x34   :  { %185 = vsyncadd [#allocation3], 4294967040 }
  0x35   :  { %186 = dma.done.wait [#allocation6], 256  }
  0x36   :  { %187 = vsyncadd [#allocation6], 4294967040  ;;  %v55_v0 = vld [vmem:[#allocation7] sm:$0xff]  ;;  %v52_v2 = vld [vmem:[#allocation2] sm:$0xff]  ;;  %s195_s21 = smov [#allocation8]  }
  0x37   :  { %v56_v1 = vadd.f32 1e-05, %v55_v0  ;;  %v54_v3 = vld [vmem:[#allocation5] sm:$0xff]  ;;  %v53_v4 = vld [vmem:[#allocation2 + $0x8] sm:$0xff]  ;;  %s73_s22 = sshll.u32 %s195_s21, 4  ;;  %s74_s22 = int_to_ptr.vmem [resolvable:$true] %s73_s22 }
  0x38   :  { %v58_v5 = vsub.f32 %v52_v2, %v54_v3  ;;  %v59_v6 = vsub.f32 %v53_v4, %v54_v3  ;;  %s162_s2 = scalar_lea.vmem %s74_s22, 256  ;;  %p167_p11 = scmp.lt.s32.totalorder %s74_s22, %s74_s22 }
  0x39   :  { %94 = vrsqrt.f32 %v56_v1  ;;  %p163_p10 = scmp.ne.s32.totalorder %s74_s22, %s162_s2  ;;  %p168_p12 = scmp.lt.s32.totalorder %s162_s2, %s162_s2 }
  0x3b   :  { %p169_p13 = por %p168_p12, %p167_p11 }
  0x3d   :  { %p170_p0 = pnand %p169_p13, %p163_p10 }
  0x43   :  { %v95_v7 = vpop.eup %94 }
  0x44   :  { %v60_v8 = vmul.f32 %v95_v7, %v58_v5  ;;  %v61_v9 = vmul.f32 %v95_v7, %v59_v6 }
  0x46   :  { %v86_v10 = vclamps-f32 %v60_v8, 5.0  ;;  %v87_v11 = vclamps-f32 %v61_v9, 5.0 }
  0x48   :  { %66 = vst [vmem:[#allocation8] sm:$0xff] %v86_v10  ;;  %67 = vst [vmem:[#allocation8 + $0x8] sm:$0xff] %v87_v11 }
  0x49   :  { %173 = shalt.err (!%p170_p0)
}
  0x4a   :  { %s174_s25 = scalar_lea.hbm %s280_s3, 256 }
  0x4b   :  { %p175_p1 = scmp.ne.s32.totalorder %s280_s3, %s174_s25  ;;  %p178_p2 = scmp.lt.u32.totalorder %s174_s25, %s280_s3 }
  0x4d   :  { %p180_p3 = pnand %p178_p2, %p175_p1 }
  0x4f   :  { %183 = shalt.err (!%p180_p3)
}
  0x50   :  { %79 = dma.vmem_to_hbm [thread:$0]  %s74_s22, 256, %s280_s3, [#allocation4], %s192_s1, %s192_s1, %s193_s7  }
  0x51   :  { %188 = dma.done.wait [#allocation4], 256  }
  0x52   :  { %189 = vsyncadd [#allocation4], 4294967040 }
  0x53   :  { %83 = vsyncpa [#allocation3], 1 }
  0x54   :  { %84 = vsyncpa [#allocation6], 1 }
  0x55   :  { %85 = vsyncpa [#allocation4], 1 }

</bundles_post_ra>
